<compile_context>
chip_gen: v5e
topology: v5e:2x2
jax: 0.10.0
libtpu: 0.0.40
codegen_flags: <defaults>
</compile_context>

<pallas_src>
import functools
import math

import jax
import jax.numpy as jnp
from jax.experimental import pallas as pl
from jax.experimental.pallas import tpu as pltpu

_SMALL_DIM = 8  # layers with contraction or output dim <= this skip the MXU


def _mlp_kernel(bias_offsets, *refs):
    """Whole-MLP forward for one batch tile; batch lives on the 128-lane axis.

    refs = (x_ref, bias_pack_ref, w_0, ..., w_{L-1}, out_ref)
      x_ref:         (d_in,  tile_m)        features on sublanes, batch on lanes
      bias_pack_ref: (sum_i pad8(out_i), 1) f32, all biases stacked, 8-row aligned
      w_i:           (out_i, in_i)          PyTorch Linear layout, VMEM resident
      out_ref:       (d_out, tile_m)        lane-dense output tile
    """
    x_ref = refs[0]
    b_ref = refs[1]
    w_refs = refs[2:-1]
    out_ref = refs[-1]
    n_layers = len(w_refs)

    h = x_ref[...].astype(jnp.float32)                        # (d_in, tile_m)
    for li, w_ref in enumerate(w_refs):
        out_d, in_d = w_ref.shape
        b = b_ref[pl.ds(bias_offsets[li], out_d), :]          # (out_d, 1), f32
        if in_d <= _SMALL_DIM:
            # Tiny contraction (e.g. the K=2 (x, t) input layer): a 2-deep push
            # into a 128/256-deep systolic array is almost pure MXU fill/drain
            # latency, so do it as VPU broadcast multiply-adds instead.
            w = w_ref[...].astype(jnp.float32)                # (out_d, in_d)
            acc = w[:, 0:1] * h[0:1, :]
            for k in range(1, in_d):
                acc = acc + w[:, k:k + 1] * h[k:k + 1, :]
            h = acc + b
        elif out_d <= _SMALL_DIM:
            # Tiny output (the final 1-row layer): a 1-row MXU result is pure
            # latency + an MRF pop, so use VPU multiply + XLU sublane reduce
            # (that slot is otherwise idle -> free co-issue work).
            w = w_ref[...].astype(jnp.float32)                # (out_d, in_d)
            rows = [jnp.sum(w[o, :].reshape(in_d, 1) * h, axis=0, keepdims=True)
                    for o in range(out_d)]
            h = (rows[0] if out_d == 1 else jnp.concatenate(rows, axis=0)) + b
        else:
            # MXU matmul, f32 accumulation (cast is a no-op for f32 weights).
            h = jnp.dot(w_ref[...], h.astype(w_ref.dtype),
                        preferred_element_type=jnp.float32) + b
        if li < n_layers - 1:
            h = jnp.tanh(h)                                   # hidden layers only
    out_ref[...] = h.astype(out_ref.dtype)


def _is_v5e():
    try:
        kind = jax.devices()[0].device_kind.lower()
    except Exception:
        return False
    return ("v5 lite" in kind) or ("v5e" in kind) or ("v5litepod" in kind)


def pack_params(weights, biases, param_dtype=None):
    """Weight-static packing; call ONCE per parameter set, outside the hot path.

    Returns (weights, bias_pack, bias_offsets):
      * weights optionally cast to param_dtype (bf16 buys nothing at this network
        size and is force-disabled on v5e, which has no bf16 VPU/EUP);
      * all biases packed into one f32 (rows, 1) column (one DMA descriptor, one
        VMEM buffer), 8-row aligned so in-kernel sublane slices stay aligned.
        Biases are ALWAYS kept f32 (the add is f32 VPU work regardless).
    """
    if param_dtype == jnp.bfloat16 and _is_v5e():
        param_dtype = None
    if param_dtype is not None:
        weights = [jnp.asarray(w).astype(param_dtype) for w in weights]
    else:
        weights = [jnp.asarray(w, jnp.float32) for w in weights]

    bias_offsets, segs, row = [], [], 0
    for w, b in zip(weights, biases):
        out_d = int(w.shape[0])
        segs.append(jnp.reshape(jnp.asarray(b, jnp.float32), (out_d, 1)))
        bias_offsets.append(row)
        pad = (-out_d) % 8
        if pad:
            segs.append(jnp.zeros((pad, 1), jnp.float32))
        row += out_d + pad
    bias_pack = jnp.concatenate(segs, axis=0)
    return list(weights), bias_pack, tuple(bias_offsets)


def _pick_tile_m(n, tile_m, max_tile_m):
    """Default: a 2-step grid (one tile per TensorCore on v7x; only 2 pipeline
    steps on single-TC v5e/v6e), batch tile a multiple of 128, capped."""
    n128 = ((n + 127) // 128) * 128
    if tile_m is None:
        tile_m = 128 if n128 <= 128 else ((((n128 + 1) // 2) + 127) // 128) * 128
    tile_m = max(128, min(int(tile_m), int(max_tile_m)))
    return (tile_m // 128) * 128


def mlp_forward_t(x_t, weights, bias_pack, bias_offsets, *, tile_m=None,
                  max_tile_m=1024):
    """Pallas TPU forward on feature-major input: x_t (d_in, N) -> (d_out, N).

    weights/bias_pack/bias_offsets come from pack_params() (weight-static, do it
    once).  Accumulation and tanh are always float32.
    """
    d_in, n = x_t.shape
    d_out = int(weights[-1].shape[0])

    tile_m = _pick_tile_m(n, tile_m, max_tile_m)
    n_pad = ((n + tile_m - 1) // tile_m) * tile_m
    if n_pad != n:
        x_t = jnp.pad(x_t, ((0, 0), (0, n_pad - n)))   # padded cols sliced off below
    grid = (n_pad // tile_m,)

    kernel = functools.partial(_mlp_kernel, bias_offsets)

    # Advisory cost estimate so XLA schedules surrounding ops sensibly.
    flops = 2 * n_pad * sum(int(w.shape[0]) * int(w.shape[1]) for w in weights)
    transcendentals = n_pad * sum(int(w.shape[0]) for w in weights[:-1])
    bytes_accessed = (x_t.size * x_t.dtype.itemsize
                      + bias_pack.size * bias_pack.dtype.itemsize
                      + sum(w.size * w.dtype.itemsize for w in weights)
                      + d_out * n_pad * 4)
    cost = pl.CostEstimate(flops=int(flops),
                           transcendentals=int(transcendentals),
                           bytes_accessed=int(bytes_accessed))

    # Constant index_map => weights / packed biases stay resident across steps.
    in_specs = [pl.BlockSpec((d_in, tile_m), lambda i: (0, i)),
                pl.BlockSpec(bias_pack.shape, lambda i: (0, 0))]
    in_specs += [pl.BlockSpec(w.shape, lambda i: (0, 0)) for w in weights]
    out_spec = pl.BlockSpec((d_out, tile_m), lambda i: (0, i))   # lane-dense store

    out_t = pl.pallas_call(
        kernel,
        out_shape=jax.ShapeDtypeStruct((d_out, n_pad), jnp.float32),
        grid_spec=pltpu.PrefetchScalarGridSpec(
            num_scalar_prefetch=0,
            grid=grid,
            in_specs=in_specs,
            out_specs=out_spec,
        ),
        compiler_params=pltpu.CompilerParams(
            dimension_semantics=("parallel",),   # megacore-shard batch tiles (v7x)
        ),
        cost_estimate=cost,
    )(x_t, bias_pack, *weights)

    return out_t[:, :n] if n_pad != n else out_t


def mlp_forward(x, weights, biases, *, tile_m=None, max_tile_m=1024,
                param_dtype=None):
    """PyTorch-convention convenience wrapper: x (N, d_in) -> (N, d_out).

    The transpose / bias packing here are separate XLA launches; for hot loops,
    call pack_params() once and feed feature-major data to mlp_forward_t().
    """
    w_p, bias_pack, bias_offsets = pack_params(weights, biases, param_dtype)
    x_t = jnp.asarray(x, jnp.float32).T
    out_t = mlp_forward_t(x_t, w_p, bias_pack, bias_offsets,
                          tile_m=tile_m, max_tile_m=max_tile_m)
    return out_t.T


def init_params(layers, key):
    """PyTorch nn.Linear-style init U(-1/sqrt(fan_in), 1/sqrt(fan_in));
    weights in PyTorch (out_features, in_features) layout."""
    weights, biases = [], []
    for i in range(len(layers) - 1):
        fan_in, fan_out = layers[i], layers[i + 1]
        key, kw, kb = jax.random.split(key, 3)
        bound = 1.0 / math.sqrt(fan_in)
        weights.append(jax.random.uniform(kw, (fan_out, fan_in), jnp.float32,
                                          -bound, bound))
        biases.append(jax.random.uniform(kb, (fan_out,), jnp.float32,
                                         -bound, bound))
    return weights, biases


def reference_forward(x, weights, biases):
    h = x
    for i, (w, b) in enumerate(zip(weights, biases)):
        h = jnp.dot(h, w.T, precision=jax.lax.Precision.HIGHEST) + b
        if i < len(weights) - 1:
            h = jnp.tanh(h)
    return h


if __name__ == "__main__":
    # Typical PINN DNN spec: 2 inputs (x, t) -> 32-wide tanh hidden layers -> 1 output.
    # TODO(synk): the original script loads burgers_shock.mat; random collocation
    # points stand in for that data here (the forward itself is unchanged).
    layers = [2, 32, 32, 32, 1]
    batch = 2048          # auto tile -> tile_m=1024, grid=2 (one tile per v7x TC)

    key = jax.random.PRNGKey(0)
    key, kx = jax.random.split(key)
    # Collocation points generated feature-major (d_in, N): no per-call transpose.
    x_t = jax.random.normal(kx, (layers[0], batch), jnp.float32)
    weights, biases = init_params(layers, key)

    # Weight-static packing done once, outside the per-call path.
    w_p, bias_pack, bias_offsets = pack_params(weights, biases)

    out_t = jax.block_until_ready(
        mlp_forward_t(x_t, w_p, bias_pack, bias_offsets))
    out = out_t.T                                             # (N, d_out)

    ref = reference_forward(x_t.T, weights, biases)
    assert out.shape == (batch, layers[-1])
    assert jnp.allclose(out, ref, atol=1e-5, rtol=1e-5), \
        float(jnp.max(jnp.abs(out - ref)))

    # Ragged batch (exercises padding + the PyTorch-convention wrapper path).
    n2 = 300
    key, kx2 = jax.random.split(key)
    x2 = jax.random.normal(kx2, (n2, layers[0]), jnp.float32)
    out2 = jax.block_until_ready(mlp_forward(x2, weights, biases))
    ref2 = reference_forward(x2, weights, biases)
    assert out2.shape == (n2, layers[-1])
    assert jnp.allclose(out2, ref2, atol=1e-5, rtol=1e-5), \
        float(jnp.max(jnp.abs(out2 - ref2)))

    print("KERNEL_OK")
</pallas_src>

<mosaic_0001>
module attributes {stable_mosaic.version = 11 : i64} {
  func.func @_mlp_kernel(%arg0: i32, %arg1: memref<2x1024xf32, #tpu.memory_space<vmem>>, %arg2: memref<104x1xf32, #tpu.memory_space<vmem>>, %arg3: memref<32x2xf32, #tpu.memory_space<vmem>>, %arg4: memref<32x32xf32, #tpu.memory_space<vmem>>, %arg5: memref<32x32xf32, #tpu.memory_space<vmem>>, %arg6: memref<1x32xf32, #tpu.memory_space<vmem>>, %arg7: memref<1x1024xf32, #tpu.memory_space<vmem>>) attributes {dimension_semantics = [#tpu.dimension_semantics<parallel>], iteration_bounds = array<i64: 2>, scalar_prefetch = 0 : i64, scratch_operands = 0 : i64, tpu.core_type = #tpu.core_type<tc>, window_params = [{transform_indices = @transform_0, window_bounds = array<i64: 2, 1024>}, {pipeline_mode = #tpu.pipeline_mode<synchronous>, transform_indices = @transform_1, window_bounds = array<i64: 104, 1>}, {pipeline_mode = #tpu.pipeline_mode<synchronous>, transform_indices = @transform_2, window_bounds = array<i64: 32, 2>}, {pipeline_mode = #tpu.pipeline_mode<synchronous>, transform_indices = @transform_3, window_bounds = array<i64: 32, 32>}, {pipeline_mode = #tpu.pipeline_mode<synchronous>, transform_indices = @transform_4, window_bounds = array<i64: 32, 32>}, {pipeline_mode = #tpu.pipeline_mode<synchronous>, transform_indices = @transform_5, window_bounds = array<i64: 1, 32>}, {transform_indices = @transform_6, window_bounds = array<i64: 1, 1024>}]} {
    %c0 = arith.constant 0 : index
    %c0_0 = arith.constant 0 : index
    %0 = vector.load %arg1[%c0, %c0_0] : memref<2x1024xf32, #tpu.memory_space<vmem>>, vector<2x1024xf32>
    %c0_1 = arith.constant 0 : index
    %c0_2 = arith.constant 0 : index
    %1 = vector.load %arg2[%c0_1, %c0_2] : memref<104x1xf32, #tpu.memory_space<vmem>>, vector<32x1xf32>
    %c0_3 = arith.constant 0 : index
    %c0_4 = arith.constant 0 : index
    %2 = vector.load %arg3[%c0_3, %c0_4] : memref<32x2xf32, #tpu.memory_space<vmem>>, vector<32x2xf32>
    %3 = vector.extract_strided_slice %2 {offsets = [0, 0], sizes = [32, 1], strides = [1, 1]} : vector<32x2xf32> to vector<32x1xf32>
    %4 = vector.extract_strided_slice %0 {offsets = [0, 0], sizes = [1, 1024], strides = [1, 1]} : vector<2x1024xf32> to vector<1x1024xf32>
    %5 = vector.broadcast %3 : vector<32x1xf32> to vector<32x1024xf32>
    %6 = vector.broadcast %4 : vector<1x1024xf32> to vector<32x1024xf32>
    %7 = arith.mulf %5, %6 : vector<32x1024xf32>
    %8 = vector.extract_strided_slice %2 {offsets = [0, 1], sizes = [32, 1], strides = [1, 1]} : vector<32x2xf32> to vector<32x1xf32>
    %9 = vector.extract_strided_slice %0 {offsets = [1, 0], sizes = [1, 1024], strides = [1, 1]} : vector<2x1024xf32> to vector<1x1024xf32>
    %10 = vector.broadcast %8 : vector<32x1xf32> to vector<32x1024xf32>
    %11 = vector.broadcast %9 : vector<1x1024xf32> to vector<32x1024xf32>
    %12 = arith.mulf %10, %11 : vector<32x1024xf32>
    %13 = arith.addf %7, %12 : vector<32x1024xf32>
    %14 = vector.broadcast %1 : vector<32x1xf32> to vector<32x1024xf32>
    %15 = arith.addf %13, %14 : vector<32x1024xf32>
    %16 = math.tanh %15 : vector<32x1024xf32>
    %c32 = arith.constant 32 : index
    %c0_5 = arith.constant 0 : index
    %17 = vector.load %arg2[%c32, %c0_5] : memref<104x1xf32, #tpu.memory_space<vmem>>, vector<32x1xf32>
    %c0_6 = arith.constant 0 : index
    %c0_7 = arith.constant 0 : index
    %18 = vector.load %arg4[%c0_6, %c0_7] : memref<32x32xf32, #tpu.memory_space<vmem>>, vector<32x32xf32>
    %cst = arith.constant dense<0.000000e+00> : vector<32x1024xf32>
    %19 = tpu.matmul %18, %16, %cst {dimension_numbers = #tpu.dot_dimension_numbers<[1], [0], [0], [1], [0, 0, 1, 1], [], []>} : vector<32x32xf32>, vector<32x1024xf32>, vector<32x1024xf32> -> vector<32x1024xf32>
    %20 = vector.broadcast %17 : vector<32x1xf32> to vector<32x1024xf32>
    %21 = arith.addf %19, %20 : vector<32x1024xf32>
    %22 = math.tanh %21 : vector<32x1024xf32>
    %c64 = arith.constant 64 : index
    %c0_8 = arith.constant 0 : index
    %23 = vector.load %arg2[%c64, %c0_8] : memref<104x1xf32, #tpu.memory_space<vmem>>, vector<32x1xf32>
    %c0_9 = arith.constant 0 : index
    %c0_10 = arith.constant 0 : index
    %24 = vector.load %arg5[%c0_9, %c0_10] : memref<32x32xf32, #tpu.memory_space<vmem>>, vector<32x32xf32>
    %cst_11 = arith.constant dense<0.000000e+00> : vector<32x1024xf32>
    %25 = tpu.matmul %24, %22, %cst_11 {dimension_numbers = #tpu.dot_dimension_numbers<[1], [0], [0], [1], [0, 0, 1, 1], [], []>} : vector<32x32xf32>, vector<32x1024xf32>, vector<32x1024xf32> -> vector<32x1024xf32>
    %26 = vector.broadcast %23 : vector<32x1xf32> to vector<32x1024xf32>
    %27 = arith.addf %25, %26 : vector<32x1024xf32>
    %28 = math.tanh %27 : vector<32x1024xf32>
    %c96 = arith.constant 96 : index
    %c0_12 = arith.constant 0 : index
    %29 = vector.load %arg2[%c96, %c0_12] : memref<104x1xf32, #tpu.memory_space<vmem>>, vector<1x1xf32>
    %c0_13 = arith.constant 0 : index
    %c0_14 = arith.constant 0 : index
    %30 = vector.load %arg6[%c0_13, %c0_14] : memref<1x32xf32, #tpu.memory_space<vmem>>, vector<1x32xf32>
    %31 = vector.shape_cast %30 : vector<1x32xf32> to vector<32xf32>
    %32 = vector.shape_cast %31 : vector<32xf32> to vector<32x1xf32>
    %33 = vector.broadcast %32 : vector<32x1xf32> to vector<32x1024xf32>
    %34 = arith.mulf %33, %28 : vector<32x1024xf32>
    %cst_15 = arith.constant dense<0.000000e+00> : vector<1024xf32>
    %35 = vector.multi_reduction <add>, %34, %cst_15 [0] : vector<32x1024xf32> to vector<1024xf32>
    %36 = vector.shape_cast %35 : vector<1024xf32> to vector<1x1024xf32>
    %37 = vector.broadcast %29 : vector<1x1xf32> to vector<1x1024xf32>
    %38 = arith.addf %36, %37 : vector<1x1024xf32>
    %c0_16 = arith.constant 0 : index
    %c0_17 = arith.constant 0 : index
    %39 = vector.load %arg7[%c0_16, %c0_17] : memref<1x1024xf32, #tpu.memory_space<vmem>>, vector<1x1024xf32>
    tpu.vector_store %arg7[%c0_16, %c0_17], %38 {strides = array<i32>} : memref<1x1024xf32, #tpu.memory_space<vmem>>, vector<1x1024xf32>,
    return
  }
  func.func @transform_0(%arg0: i32) -> (i32, i32) {
    %c0_i32 = arith.constant 0 : i32
    %c0_i32_0 = arith.constant 0 : i32
    return %c0_i32, %arg0 : i32, i32
  }
  func.func @transform_1(%arg0: i32) -> (i32, i32) {
    %c0_i32 = arith.constant 0 : i32
    %c0_i32_0 = arith.constant 0 : i32
    %c0_i32_1 = arith.constant 0 : i32
    return %c0_i32, %c0_i32_0 : i32, i32
  }
  func.func @transform_2(%arg0: i32) -> (i32, i32) {
    %c0_i32 = arith.constant 0 : i32
    %c0_i32_0 = arith.constant 0 : i32
    %c0_i32_1 = arith.constant 0 : i32
    return %c0_i32, %c0_i32_0 : i32, i32
  }
  func.func @transform_3(%arg0: i32) -> (i32, i32) {
    %c0_i32 = arith.constant 0 : i32
    %c0_i32_0 = arith.constant 0 : i32
    %c0_i32_1 = arith.constant 0 : i32
    return %c0_i32, %c0_i32_0 : i32, i32
  }
  func.func @transform_4(%arg0: i32) -> (i32, i32) {
    %c0_i32 = arith.constant 0 : i32
    %c0_i32_0 = arith.constant 0 : i32
    %c0_i32_1 = arith.constant 0 : i32
    return %c0_i32, %c0_i32_0 : i32, i32
  }
  func.func @transform_5(%arg0: i32) -> (i32, i32) {
    %c0_i32 = arith.constant 0 : i32
    %c0_i32_0 = arith.constant 0 : i32
    %c0_i32_1 = arith.constant 0 : i32
    return %c0_i32, %c0_i32_0 : i32, i32
  }
  func.func @transform_6(%arg0: i32) -> (i32, i32) {
    %c0_i32 = arith.constant 0 : i32
    %c0_i32_0 = arith.constant 0 : i32
    return %c0_i32, %arg0 : i32, i32
  }
}

</mosaic_0001>

<bundles_post_ra>
// kernel: tpu_custom_call.1
= control target key start
LH: loop header
LB: loop body
LE: loop exit
PB: predicated region body
PF: predicated region fallthrough
CT: control target
= control target key end

     0   :  { %11 = vsyncpa [#allocation3], 0  ;;  %s2515_s0 = inlined_call_operand.vmem [shape: f32[2,2048], index: 0, kind: input, shape index: {}]   ;;  %s2516_s1 = inlined_call_operand.vmem [shape: f32[104,1], index: 1, kind: input, shape index: {}]   ;;  %s2517_s2 = inlined_call_operand.vmem [shape: f32[32,2], index: 2, kind: input, shape index: {}]   ;;  %s2518_s3 = inlined_call_operand.vmem [shape: f32[32,32], index: 3, kind: input, shape index: {}]   ;;  %s2519_s4 = inlined_call_operand.vmem [shape: f32[32,32], index: 4, kind: input, shape index: {}]   ;;  %s2520_s5 = inlined_call_operand.vmem [shape: f32[1,32], index: 5, kind: input, shape index: {}]   ;;  %s2521_s6 = inlined_call_operand.hbm [shape: f32[1,2048], index: 6, kind: output, shape index: {}]  }
   0x1   :  { %13 = vsyncpa [#allocation3 + $0x1], 0  ;;  %s1813_s21 = smov 0   ;;  %s1815_s22 = smov 0  }
   0x2   :  { %s1817_s23 = smov 0   ;;  %s1819_s24 = smov 0  }
   0x3 LB: > { %s1387_s25 = sadd.s32 4294967295, %s1774_s24   ;;  %s1388_s26 = sadd.s32 4294967294, %s1774_s24   ;;  %s1774_s24 = sphi %s1819_s24, %s2527_s24   ;;  %s1770_s23 = sphi %s1817_s23, %s2526_s23   ;;  %s1766_s22 = sphi %s1815_s22, %s2525_s22   ;;  %s1762_s21 = sphi %s1813_s21, %s2524_s21  }
   0x4   : > { %s1836_s27 = sadd.s32 1, %s1774_s24   ;;  %s157_s28 = sadd.s32 1, %s1770_s23 }
   0x5   : > { %s154_s29 = ssub.s32 %s1774_s24, %s1836_s27  ;;  %p167_p0 = scmp.ne.s32.totalorder %s1770_s23, %s1766_s22 }
   0x6   : > { %p155_p1 = scmp.eq.s32.totalorder %s154_s29, 0  ;;  %p168_p2 = scmp.eq.s32.totalorder %s1387_s25, 1 }
   0x7   : > { %p173_p3 = scmp.ne.s32.totalorder %s1766_s22, %s1762_s21  ;;  %p174_p4 = scmp.eq.s32.totalorder %s1388_s26, 1 }
   0x8   : > { %s1848_s30 = scalar_select %p155_p1, %s1770_s23, %s157_s28  }
   0x9   : > { %p1850_p5 = por %p168_p2, %p167_p0  ;;  %p1854_p6 = por %p174_p4, %p173_p3 }
   0xa   : > { %p1391_p7 = scmp.ge.s32.totalorder %s1774_s24, 1  ;;  %p216_p8 = scmp.lt.s32.totalorder %s1774_s24, 3 }
   0xc   : > { %p217_p9 = pnand %p1391_p7, %p216_p8 }
   0xd   : > { %s1916_s11 = sshll.u32 (!%p217_p9), %s1387_s25, 3  ;;  %s243_s26 = sand.u32 (!%p217_p9), 1, %s1766_s22  }
   0xe   : > { %220 = sbr.rel (%p217_p9) target bundleno = 578 (0x242), region = 44  ;;  %p247_p10 = scmp.lt.s32.totalorder (!%p217_p9), %s1916_s11, 15 }
   0xf   : > { %s2479_s28 = sshll.u32 (!%p217_p9), %s243_s26, 3  ;;  %s1324_s10 = scalar_lea.hbm (!%p217_p9), %s2521_s6, %s1916_s11 }
  0x10   : > { %s1328_s14 = sshll.u32 (!%p217_p9), %s1324_s10, 4  ;;  %s1732_s18 = scalar_lea.hbm (!%p217_p9), %s2521_s6, 16  ;;  %s1329_s14 = int_to_ptr.hbm [resolvable:$true] %s1328_s14 }
  0x11   : > { %s1726_s15 = sshra.s32 (!%p217_p9), %s1329_s14, 4  ;;  %s1727_s15 = int_to_ptr.hbm [resolvable:$true] %s1726_s15 }
  0x12   : > { %p1733_p0 = scmp.lt.s32.totalorder (!%p217_p9), %s1727_s15, %s2521_s6 }
  0x13   : > { %v262_v0 = vld [vmem:[%s2517_s2 + $0x18] sm:$0xff]  ;;  %v261_v1 = vld [vmem:[%s2517_s2 + $0x10] sm:$0xff]  ;;  %v260_v2 = vld [vmem:[%s2517_s2 + $0x8] sm:$0xff]  ;;  %v1776_v3 = vmov 0   ;;  %v1777_v4 = vmov 1   ;;  %s248_s12 = scalar_select %p247_p10, %s1916_s11, 15 }
  0x14   : > { %1508 = vset.pattern.permute.xlu2 %v1776_v3  ;;  %1506 = vset.pattern.permute.xlu1 %v1776_v3  ;;  %v259_v5 = vld [vmem:[%s2517_s2] sm:$0xff]  ;;  %v258_v6 = vld [vmem:[%s2516_s1 + $0x18] sm:$0xff]  ;;  %v257_v7 = vld [vmem:[%s2516_s1 + $0x10] sm:$0xff]  ;;  %vm557_vm0 = vcmask 261120   ;;  %vm1299_vm1 = vcmask 1042434   ;;  %vm1297_vm2 = vcmask 1040384  }
  0x15   : > { %1504 = vset.pattern.permute.xlu0 %v1776_v3  ;;  %275 = vperm.xlu1 %1506, %v261_v1   ;;  %v255_v8 = vld [vmem:[%s2516_s1] sm:$0xff]  ;;  %v256_v9 = vld [vmem:[%s2516_s1 + $0x8] sm:$0xff]  ;;  %v532_v10 = vld [vmem:[%s2516_s1 + $0x38] sm:$0xff]  ;;  %s1394_s13 = sshll.u32 %s248_s12, 1  ;;  %vm1303_vm3 = vcmask 1044484   ;;  %vm1305_vm4 = vcmask 1046534  }
  0x16   : > { %280 = vperm.xlu0 %1504, %v262_v0   ;;  %270 = vperm.xlu2 %1508, %v260_v2   ;;  %v834_v11 = vld [vmem:[%s2516_s1 + $0x40] sm:$0xff]  ;;  %v531_v12 = vld [vmem:[%s2516_s1 + $0x30] sm:$0xff]  ;;  %v530_v13 = vld [vmem:[%s2516_s1 + $0x28] sm:$0xff]  ;;  %s250_s16 = scalar_lea.vmem %s2515_s0, %s1394_s13  ;;  %vm1301_vm5 = vcmask 1041408   ;;  %vm1307_vm6 = vcmask 1045508   ;;  %s245_s12 = scalar_lea.vmem [#allocation2], %s2479_s28 }
  0x17   : > { %v837_v14 = vld [vmem:[%s2516_s1 + $0x58] sm:$0xff]  ;;  %v529_v15 = vld [vmem:[%s2516_s1 + $0x20] sm:$0xff]  ;;  %v835_v16 = vld [vmem:[%s2516_s1 + $0x48] sm:$0xff]  ;;  %s1326_s13 = sshll.u32 %s245_s12, 4  ;;  %vm1309_vm7 = vcmask 1043456   ;;  %s1314_s11 = scalar_lea.sflag [#allocation3], %s243_s26  ;;  %s1327_s13 = int_to_ptr.vmem [resolvable:$true] %s1326_s13 }
  0x18   : > { %v836_v17 = vld [vmem:[%s2516_s1 + $0x50] sm:$0xff]  ;;  %v253_v20 = vld [vmem:[%s250_s16] sm:$0xff]  ;;  %v254_v21 = vld [vmem:[%s250_s16 + $0x8] sm:$0xff]  ;;  %s1728_s16 = scalar_lea.hbm %s1727_s15, 8 }
  0x19   : > { %v285_v22 = vperm.slane %v253_v20, 0  ;;  %v286_v23 = vperm.slane %v253_v20, 2  ;;  %v357_v24 = vperm.slane %v253_v20, 1  ;;  %v358_v25 = vperm.slane %v253_v20, 3  ;;  %p1729_p11 = scmp.ne.s32.totalorder %s1727_s15, %s1728_s16  ;;  %p1734_p1 = scmp.lt.s32.totalorder %s1732_s18, %s1728_s16 }
  0x1a   : > { %v287_v26 = vperm.slane %v253_v20, 4  ;;  %v359_v27 = vperm.slane %v253_v20, 5  ;;  %v288_v28 = vperm.slane %v253_v20, 6  ;;  %v360_v29 = vperm.slane %v253_v20, 7 }
  0x1b   : > { %v361_v30 = vperm.slane %v254_v21, 1  ;;  %v289_v31 = vperm.slane %v254_v21, 0  ;;  %v301_v33 = vperm.slane %v285_v22, 0  ;;  %v302_v34 = vperm.slane %v286_v23, 0  ;;  %p1730_p12 = pnand %p1729_p11, %p1850_p5  ;;  %p1735_p2 = por %p1734_p1, %p1733_p0 }
  0x1c   : > { %v1929_v36 = vperm.slane %v357_v24, 1  ;;  %v1931_v37 = vperm.slane %v358_v25, 1  ;;  %v303_v38 = vperm.slane %v287_v26, 0  ;;  %v1933_v39 = vperm.slane %v359_v27, 1 }
  0x1d   : > { %1507 = vset.pattern.permute.xlu1 %v1777_v4  ;;  %v304_v41 = vperm.slane %v288_v28, 0  ;;  %v1937_v42 = vperm.slane %v360_v29, 1  ;;  %v1939_v43 = vperm.slane %v361_v30, 1  ;;  %v290_v44 = vperm.slane %v254_v21, 2  ;;  %p1731_p13 = pneg %p1730_p12 }
  0x1e   : > { %1505 = vset.pattern.permute.xlu0 %v1777_v4  ;;  %1509 = vset.pattern.permute.xlu2 %v1777_v4  ;;  %v1941_v45 = vperm.slane %v289_v31, 0  ;;  %v362_v46 = vperm.slane %v254_v21, 3  ;;  %v291_v47 = vperm.slane %v254_v21, 4  ;;  %v363_v48 = vperm.slane %v254_v21, 5 }
  0x1f   : > { %354 = vperm.xlu0 %1505, %v262_v0   ;;  %350 = vperm.xlu1 %1507, %v261_v1   ;;  %v292_v52 = vperm.slane %v254_v21, 6  ;;  %v364_v56 = vperm.slane %v254_v21, 7  ;;  %v1959_v61 = vperm.slane %v290_v44, 0  ;;  %p1736_p3 = pnand %p1735_p2, %p1731_p13 }
  0x20   : > { %346 = vperm.xlu2 %1509, %v260_v2   ;;  %v1961_v62 = vperm.slane %v362_v46, 1  ;;  %v1963_v63 = vperm.slane %v291_v47, 0  ;;  %v1965_v0 = vperm.slane %v363_v48, 1 }
  0x21   : > { %v1967_v1 = vperm.slane %v292_v52, 0 }
  0x27   : > { %1510 = vset.pattern.permute.xlu1 %v1776_v3  ;;  %342 = vperm.xlu0 %1505, %v259_v5  }
  0x28   : > { %1511 = vset.pattern.permute.xlu2 %v1776_v3  ;;  %462 = vperm.xlu1 %1510, %v258_v6   ;;  %v1969_v6 = vperm.slane %v364_v56, 1 }
  0x29   : > { %265 = vperm.xlu2 %1511, %v259_v5  }
  0x2f   : > { %1512 = vset.pattern.permute.xlu0 %v1776_v3 }
  0x30   : > { %457 = vperm.xlu1 %1510, %v257_v7   ;;  %447 = vperm.xlu0 %1512, %v255_v8  }
  0x31   : > { %452 = vperm.xlu2 %1511, %v256_v9  }
  0x38   : > { %554 = vperm.xlu1 %1510, %v532_v10   ;;  %844 = vperm.xlu0 %1512, %v834_v11  }
  0x39   : > { %549 = vperm.xlu2 %1511, %v531_v12  }
  0x40   : > { %544 = vperm.xlu1 %1510, %v530_v13   ;;  %859 = vperm.xlu0 %1512, %v837_v14  }
  0x41   : > { %539 = vperm.xlu2 %1511, %v529_v15  }
  0x48   : > { %849 = vperm.xlu1 %1510, %v835_v16  }
  0x49   : > { %854 = vperm.xlu2 %1511, %v836_v17  }
  0x70   : > { %v1919_v18 = vpop.permute.xlu2 %270 }
  0x71   : > { %v317_v49 = vmul.f32 %v301_v33, %v1919_v18  ;;  %v318_v50 = vmul.f32 %v302_v34, %v1919_v18  ;;  %v319_v51 = vmul.f32 %v303_v38, %v1919_v18  ;;  %v320_v57 = vmul.f32 %v304_v41, %v1919_v18 }
  0x72   : > { %v321_v59 = vmul.f32 %v1941_v45, %v1919_v18 }
  0x7a   : > { %v1925_v19 = vpop.permute.xlu2 %346 }
  0x7b   : > { %v389_v53 = vmul.f32 %v1929_v36, %v1925_v19  ;;  %v390_v54 = vmul.f32 %v1931_v37, %v1925_v19  ;;  %v391_v55 = vmul.f32 %v1933_v39, %v1925_v19  ;;  %v392_v58 = vmul.f32 %v1937_v42, %v1925_v19 }
  0x7c   : > { %v393_v60 = vmul.f32 %v1939_v43, %v1925_v19 }
  0x7d   : > { %v421_v2 = vadd.f32 %v389_v53, %v317_v49  ;;  %v422_v4 = vadd.f32 %v390_v54, %v318_v50  ;;  %v423_v5 = vadd.f32 %v391_v55, %v319_v51  ;;  %v424_v9 = vadd.f32 %v392_v58, %v320_v57 }
  0x7e   : > { %v1981_v12 = vadd.f32 %v393_v60, %v321_v59  ;;  %v2039_v50 = vmul.f32 %v1959_v61, %v1919_v18  ;;  %v2051_v58 = vmul.f32 %v1961_v62, %v1925_v19 }
  0x83   : > { %v1935_v40 = vpop.permute.xlu2 %265 }
  0x84   : > { %v1976_v10 = vmul.f32 %v301_v33, %v1935_v40  ;;  %v1979_v11 = vmul.f32 %v302_v34, %v1935_v40  ;;  %v1990_v15 = vmul.f32 %v303_v38, %v1935_v40  ;;  %v1993_v16 = vmul.f32 %v304_v41, %v1935_v40 }
  0x87   : > { %v1927_v32 = vpop.permute.xlu1 %275 }
  0x88   : > { %v281_v35 = vpop.permute.xlu0 %280  ;;  %v1984_v13 = vmul.f32 %v301_v33, %v1927_v32  ;;  %v1987_v14 = vmul.f32 %v302_v34, %v1927_v32  ;;  %v327_v22 = vmul.f32 %v303_v38, %v1927_v32  ;;  %v1999_v23 = vmul.f32 %v304_v41, %v1927_v32 }
  0x89   : > { %v333_v20 = vmul.f32 %v301_v33, %v281_v35  ;;  %v334_v21 = vmul.f32 %v302_v34, %v281_v35  ;;  %v335_v24 = vmul.f32 %v303_v38, %v281_v35  ;;  %v336_v25 = vmul.f32 %v304_v41, %v281_v35 }
  0x8a   : > { %v337_v27 = vmul.f32 %v1941_v45, %v281_v35  ;;  %v338_v31 = vmul.f32 %v1959_v61, %v281_v35  ;;  %v2014_v38 = vmul.f32 %v1963_v63, %v281_v35  ;;  %v2017_v41 = vmul.f32 %v1967_v1, %v281_v35 }
  0x8b   : > { %v1995_v17 = vpop.permute.xlu2 %452  ;;  %v2022_v46 = vmul.f32 %v1941_v45, %v1927_v32  ;;  %v2026_v47 = vmul.f32 %v1959_v61, %v1927_v32  ;;  %v2030_v48 = vmul.f32 %v1963_v63, %v1927_v32  ;;  %v2035_v35 = vmul.f32 %v1967_v1, %v1927_v32 }
  0x8c   : > { %v473_v26 = vadd.f32 %v1995_v17, %v421_v2  ;;  %v474_v34 = vadd.f32 %v1995_v17, %v422_v4  ;;  %v475_v44 = vadd.f32 %v1995_v17, %v423_v5  ;;  %v476_v49 = vadd.f32 %v1995_v17, %v424_v9 }
  0x8d   : > { %v2061_v9 = vmul.f32 %v1963_v63, %v1919_v18 }
  0x8e   : > { %1520 = vtanh.f32 %v473_v26 }
  0x8f   : > { %1522 = vtanh.f32 %v474_v34 }
  0x90   : > { %1524 = vtanh.f32 %v475_v44 }
  0x91   : > { %v1971_v7 = vpop.permute.xlu0 %354  ;;  %v1973_v8 = vpop.permute.xlu1 %350  ;;  %1526 = vtanh.f32 %v476_v49 }
  0x92   : > { %v405_v28 = vmul.f32 %v1929_v36, %v1971_v7  ;;  %v406_v29 = vmul.f32 %v1931_v37, %v1971_v7  ;;  %v407_v30 = vmul.f32 %v1933_v39, %v1971_v7  ;;  %v408_v33 = vmul.f32 %v1937_v42, %v1971_v7 }
  0x93   : > { %v409_v55 = vmul.f32 %v1939_v43, %v1971_v7  ;;  %v410_v32 = vmul.f32 %v1961_v62, %v1971_v7  ;;  %v397_v5 = vmul.f32 %v1929_v36, %v1973_v8  ;;  %v400_v26 = vmul.f32 %v1937_v42, %v1973_v8 }
  0x94   : > { %v437_v52 = vadd.f32 %v405_v28, %v333_v20  ;;  %v438_v53 = vadd.f32 %v406_v29, %v334_v21  ;;  %v439_v54 = vadd.f32 %v407_v30, %v335_v24  ;;  %v440_v57 = vadd.f32 %v408_v33, %v336_v25  ;;  %v2067_v25 = vpop.eup %1520 }
  0x95   : > { %v398_v20 = vmul.f32 %v1931_v37, %v1973_v8  ;;  %v399_v21 = vmul.f32 %v1933_v39, %v1973_v8  ;;  %v441_v24 = vadd.f32 %v409_v55, %v337_v27  ;;  %v442_v29 = vadd.f32 %v410_v32, %v338_v31  ;;  %v2082_v34 = vpop.eup %1522 }
  0x96   : > { %v2076_v33 = vmul.f32 %v1965_v0, %v1925_v19  ;;  %v2080_v27 = vmul.f32 %v1967_v1, %v1919_v18  ;;  %v2089_v31 = vmul.f32 %v1969_v6, %v1925_v19  ;;  %v2091_v49 = vpop.eup %1524  ;;  %v432_v32 = vadd.f32 %v400_v26, %v1999_v23 }
  0x97   : > { %v431_v18 = vadd.f32 %v399_v21, %v327_v22  ;;  %v2097_v55 = vpop.eup %1526  ;;  %v401_v21 = vmul.f32 %v1939_v43, %v1973_v8 }
  0x99   : > { %v2041_v51 = vpop.permute.xlu0 %342 }
  0x9a   : > { %v2045_v56 = vpop.permute.xlu1 %462  ;;  %v381_v28 = vmul.f32 %v1929_v36, %v2041_v51  ;;  %v382_v44 = vmul.f32 %v1931_v37, %v2041_v51 }
  0x9b   : > { %v489_v59 = vadd.f32 %v2045_v56, %v437_v52  ;;  %v490_v60 = vadd.f32 %v2045_v56, %v438_v53  ;;  %v491_v2 = vadd.f32 %v2045_v56, %v439_v54  ;;  %v492_v4 = vadd.f32 %v2045_v56, %v440_v57 }
  0x9c   : > { %v493_v30 = vadd.f32 %v2045_v56, %v441_v24  ;;  %v494_v36 = vadd.f32 %v2045_v56, %v442_v29  ;;  %v429_v52 = vadd.f32 %v397_v5, %v1984_v13  ;;  %v430_v53 = vadd.f32 %v398_v20, %v1987_v14 }
  0x9d   : > { %1528 = vtanh.f32 %v489_v59  ;;  %v383_v54 = vmul.f32 %v1933_v39, %v2041_v51  ;;  %v413_v19 = vadd.f32 %v381_v28, %v1976_v10  ;;  %v384_v59 = vmul.f32 %v1937_v42, %v2041_v51 }
  0x9e   : > { %1530 = vtanh.f32 %v490_v60  ;;  %v411_v13 = vmul.f32 %v1965_v0, %v1971_v7  ;;  %v414_v10 = vadd.f32 %v382_v44, %v1979_v11  ;;  %v412_v42 = vmul.f32 %v1969_v6, %v1971_v7 }
  0x9f   : > { %1532 = vtanh.f32 %v491_v2  ;;  %v415_v20 = vadd.f32 %v383_v54, %v1990_v15  ;;  %v416_v11 = vadd.f32 %v384_v59, %v1993_v16  ;;  %v402_v7 = vmul.f32 %v1961_v62, %v1973_v8 }
  0xa0   : > { %1534 = vtanh.f32 %v492_v4  ;;  %v443_v29 = vadd.f32 %v411_v13, %v2014_v38  ;;  %v403_v15 = vmul.f32 %v1965_v0, %v1973_v8  ;;  %v444_v44 = vadd.f32 %v412_v42, %v2017_v41 }
  0xa1   : > { %1536 = vtanh.f32 %v493_v30  ;;  %v404_v16 = vmul.f32 %v1969_v6, %v1973_v8  ;;  %v477_v38 = vadd.f32 %v1995_v17, %v1981_v12  ;;  %v434_v41 = vadd.f32 %v402_v7, %v2026_v47 }
  0xa2   : > { %v2099_v57 = vpop.permute.xlu1 %457  ;;  %v2101_v37 = vpop.permute.xlu0 %447  ;;  %1538 = vtanh.f32 %v494_v36  ;;  %v496_v54 = vadd.f32 %v2045_v56, %v444_v44  ;;  %v426_v8 = vadd.f32 %v2051_v58, %v2039_v50  ;;  %v435_v59 = vadd.f32 %v403_v15, %v2030_v48  ;;  %v535_v15 = vld [vmem:[%s2518_s3 + $0x10] sm:$0xff] }
  0xa3   : > { %v1529_v14 = vpop.eup %1528  ;;  %v481_v22 = vadd.f32 %v2099_v57, %v429_v52  ;;  %v482_v39 = vadd.f32 %v2099_v57, %v430_v53  ;;  %v483_v60 = vadd.f32 %v2099_v57, %v431_v18  ;;  %v484_v23 = vadd.f32 %v2099_v57, %v432_v32 }
  0xa4   : > { %v1531_v2 = vpop.eup %1530  ;;  %582 = vmatpush.msra.mxu0 %v1529_v14  ;;  %v465_v5 = vadd.f32 %v2101_v37, %v413_v19  ;;  %v466_v26 = vadd.f32 %v2101_v37, %v414_v10  ;;  %v467_v28 = vadd.f32 %v2101_v37, %v415_v20  ;;  %v468_v30 = vadd.f32 %v2101_v37, %v416_v11  ;;  %v534_v20 = vld [vmem:[%s2518_s3 + $0x8] sm:$0xff] }
  0xa5   : > { %v1533_v4 = vpop.eup %1532  ;;  %611 = vmatpush.msra.mxu1 %v1531_v2  ;;  %1540 = vtanh.f32 %v481_v22  ;;  %v495_v52 = vadd.f32 %v2045_v56, %v443_v29  ;;  %v433_v53 = vadd.f32 %v401_v21, %v2022_v46  ;;  %v427_v46 = vadd.f32 %v2076_v33, %v2061_v9 }
  0xa6   : > { %v1535_v24 = vpop.eup %1534  ;;  %640 = vmatpush.msra.mxu2 %v1533_v4  ;;  %1542 = vtanh.f32 %v482_v39  ;;  %v486_v13 = vadd.f32 %v2099_v57, %v434_v41  ;;  %v436_v56 = vadd.f32 %v404_v16, %v2035_v35  ;;  %v428_v47 = vadd.f32 %v2089_v31, %v2080_v27 }
  0xa7   : > { %669 = vmatpush.msra.mxu3 %v1535_v24  ;;  %1544 = vtanh.f32 %v483_v60  ;;  %v2132_v36 = vpop.eup %1536  ;;  %v485_v19 = vadd.f32 %v2099_v57, %v433_v53  ;;  %v487_v58 = vadd.f32 %v2099_v57, %v435_v59  ;;  %v313_v48 = vmul.f32 %v1941_v45, %v1935_v40 }
  0xa8   : > { %1546 = vtanh.f32 %v484_v23  ;;  %v2138_v18 = vpop.eup %1538  ;;  %v385_v9 = vmul.f32 %v1939_v43, %v2041_v51  ;;  %v488_v35 = vadd.f32 %v2099_v57, %v436_v56  ;;  %v314_v27 = vmul.f32 %v1959_v61, %v1935_v40  ;;  %v2167_v43 = vld [vmem:[%s2518_s3] sm:$0xff] }
  0xa9   : > { %1548 = vtanh.f32 %v465_v5  ;;  %v386_v31 = vmul.f32 %v1961_v62, %v2041_v51  ;;  %v315_v45 = vmul.f32 %v1963_v63, %v1935_v40  ;;  %v387_v61 = vmul.f32 %v1965_v0, %v2041_v51 }
  0xaa   : > { %1550 = vtanh.f32 %v466_v26  ;;  %v478_v62 = vadd.f32 %v1995_v17, %v426_v8  ;;  %v388_v57 = vmul.f32 %v1969_v6, %v2041_v51  ;;  %v479_v63 = vadd.f32 %v1995_v17, %v427_v46 }
  0xab   : > { %v1541_v32 = vpop.eup %1540  ;;  %1552 = vtanh.f32 %v467_v28  ;;  %v417_v0 = vadd.f32 %v385_v9, %v313_v48  ;;  %v419_v51 = vadd.f32 %v387_v61, %v315_v45  ;;  %v1141_v46 = vlaneseq  ;;  %v2259_v45 = vld [vmem:[%s2520_s5] ss:$0 sm:$0xff] }
  0xac   : > { %v1543_v12 = vpop.eup %1542  ;;  %583 = vmatpush.msra.mxu0 %v1541_v32  ;;  %1554 = vtanh.f32 %v468_v30  ;;  %v536_v30 = vld [vmem:[%s2518_s3 + $0x18] sm:$0xff] }
  0xad   : > { %v1545_v50 = vpop.eup %1544  ;;  %612 = vmatpush.msra.mxu1 %v1543_v12  ;;  %1556 = vtanh.f32 %v495_v52  ;;  %v469_v6 = vadd.f32 %v2101_v37, %v417_v0  ;;  %v471_v23 = vadd.f32 %v2101_v37, %v419_v51 }
  0xae   : > { %v1547_v33 = vpop.eup %1546  ;;  %641 = vmatpush.msra.mxu2 %v1545_v50  ;;  %584 = vmatpush.msra.mxu0 %v2067_v25  ;;  %1558 = vtanh.f32 %v496_v54  ;;  %v2245_v50 = vshrl.u32 %v1141_v46, 7 }
  0xaf   : > { %v1549_v14 = vpop.eup %1548  ;;  %670 = vmatpush.msra.mxu3 %v1547_v33  ;;  %613 = vmatpush.msra.mxu1 %v2082_v34  ;;  %1560 = vtanh.f32 %v485_v19  ;;  %v316_v34 = vmul.f32 %v1967_v1, %v1935_v40  ;;  %v418_v40 = vadd.f32 %v386_v31, %v314_v27  ;;  %v2239_v19 = vpop.permute.xlu1 %554 }
  0xb0   : > { %v1551_v25 = vpop.eup %1550  ;;  %642 = vmatpush.msra.mxu2 %v2091_v49  ;;  %585 = vmatpush.msra.mxu0 %v1549_v14  ;;  %1562 = vtanh.f32 %v486_v13  ;;  %v480_v49 = vadd.f32 %v1995_v17, %v428_v47 }
  0xb1   : > { %v1553_v22 = vpop.eup %1552  ;;  %671 = vmatpush.msra.mxu3 %v2097_v55  ;;  %614 = vmatpush.msra.mxu1 %v1551_v25  ;;  %1564 = vtanh.f32 %v487_v58  ;;  %v470_v17 = vadd.f32 %v2101_v37, %v418_v40  ;;  %v420_v60 = vadd.f32 %v388_v57, %v316_v34 }
  0xb2   : > { %v1555_v39 = vpop.eup %1554  ;;  %643 = vmatpush.msra.mxu2 %v1553_v22  ;;  %1395 = vmatmul.msk.f32.vlgmr.msra.gmra.mxu0 %vm557_vm0, %v2167_v43  ;;  %1566 = vtanh.f32 %v488_v35 }
  0xb3   : > { %v1557_v1 = vpop.eup %1556  ;;  %672 = vmatpush.msra.mxu3 %v1555_v39  ;;  %1399 = vmatmul.msk.f32.vlgmr.msra.gmra.mxu1 %vm557_vm0, %v2167_v43  ;;  %1568 = vtanh.f32 %v477_v38  ;;  %v472_v42 = vadd.f32 %v2101_v37, %v420_v60 }
  0xb4   : > { %v1559_v55 = vpop.eup %1558  ;;  %1403 = vmatmul.msk.f32.vlgmr.msra.gmra.mxu2 %vm557_vm0, %v2167_v43  ;;  %1407 = vmatmul.msk.f32.vlgmr.msra.gmra.mxu3 %vm557_vm0, %v2167_v43  ;;  %1570 = vtanh.f32 %v478_v62 }
  0xb5   : > { %v1561_v2 = vpop.eup %1560  ;;  %698 = vmatpush.msrb.mxu0 %v2132_v36  ;;  %727 = vmatpush.msrb.mxu1 %v2138_v18  ;;  %1572 = vtanh.f32 %v479_v63  ;;  %v2237_v18 = vpop.permute.xlu2 %549 }
  0xb6   : > { %v1563_v10 = vpop.eup %1562  ;;  %756 = vmatpush.msrb.mxu2 %v1557_v1  ;;  %785 = vmatpush.msrb.mxu3 %v1559_v55  ;;  %1574 = vtanh.f32 %v480_v49 }
  0xb7   : > { %v1565_v4 = vpop.eup %1564  ;;  %699 = vmatpush.msrb.mxu0 %v1561_v2  ;;  %728 = vmatpush.msrb.mxu1 %v1563_v10  ;;  %1576 = vtanh.f32 %v469_v6  ;;  %v2251_v27 = vpop.permute.xlu1 %544  ;;  %v1155_v10 = vadd.s32 16, %v2245_v50 }
  0xb8   : > { %v1567_v5 = vpop.eup %1566  ;;  %757 = vmatpush.msrb.mxu2 %v1565_v4  ;;  %1578 = vtanh.f32 %v470_v17  ;;  %1513 = vset.pattern.permute.xlu1 %v2245_v50 }
  0xb9   : > { %v1569_v21 = vpop.eup %1568  ;;  %786 = vmatpush.msrb.mxu3 %v1567_v5  ;;  %1580 = vtanh.f32 %v471_v23  ;;  %1515 = vset.pattern.permute.xlu0 %v1155_v10 }
  0xba   : > { %v1571_v24 = vpop.eup %1570  ;;  %700 = vmatpush.msrb.mxu0 %v1569_v21  ;;  %1582 = vtanh.f32 %v472_v42 }
  0xbb   : > { %v1573_v26 = vpop.eup %1572  ;;  %729 = vmatpush.msrb.mxu1 %v1571_v24  ;;  %1396 = vmatmul.msk.f32.gmra.mxu0 %vm557_vm0, %v534_v20 }
  0xbc   : > { %v1575_v37 = vpop.eup %1574  ;;  %758 = vmatpush.msrb.mxu2 %v1573_v26  ;;  %1400 = vmatmul.msk.f32.gmra.mxu1 %vm557_vm0, %v534_v20  ;;  %v2282_v26 = vld [vmem:[%s2519_s4] sm:$0xff] }
  0xbd   : > { %v1577_v11 = vpop.eup %1576  ;;  %787 = vmatpush.msrb.mxu3 %v1575_v37  ;;  %1404 = vmatmul.msk.f32.gmra.mxu2 %vm557_vm0, %v534_v20  ;;  %v2241_v59 = vpop.permute.xlu2 %539 }
  0xbe   : > { %v1579_v7 = vpop.eup %1578  ;;  %701 = vmatpush.msrb.mxu0 %v1577_v11  ;;  %1408 = vmatmul.msk.f32.gmra.mxu3 %vm557_vm0, %v534_v20 }
  0xbf   : > { %v1581_v28 = vpop.eup %1580  ;;  %730 = vmatpush.msrb.mxu1 %v1579_v7 }
  0xc0   : > { %v1583_v29 = vpop.eup %1582  ;;  %759 = vmatpush.msrb.mxu2 %v1581_v28  ;;  %1145 = vperm.xlu1 %1513, %v2259_v45  }
  0xc1   : > { %788 = vmatpush.msrb.mxu3 %v1583_v29  ;;  %1157 = vperm.xlu0 %1515, %v2259_v45  }
  0xc3   : > { %1397 = vmatmul.msk.f32.gmra.mxu0 %vm557_vm0, %v535_v15 }
  0xc4   : > { %1401 = vmatmul.msk.f32.gmra.mxu1 %vm557_vm0, %v535_v15 }
  0xc5   : > { %1405 = vmatmul.msk.f32.gmra.mxu2 %vm557_vm0, %v535_v15 }
  0xc6   : > { %1409 = vmatmul.msk.f32.gmra.mxu3 %vm557_vm0, %v535_v15 }
  0xc9   : > { %1518 = vset.pattern.permute.xlu0 %v1776_v3 }
  0xcb   : > { %1398 = vmatmul.msk.f32.gmra.mxu0 %vm557_vm0, %v536_v30 }
  0xcc   : > { %1402 = vmatmul.msk.f32.gmra.mxu1 %vm557_vm0, %v536_v30 }
  0xcd   : > { %1406 = vmatmul.msk.f32.gmra.mxu2 %vm557_vm0, %v536_v30 }
  0xce   : > { %1410 = vmatmul.msk.f32.gmra.mxu3 %vm557_vm0, %v536_v30 }
  0xd3   : > { %1411 = vmatmul.msk.f32.vlgmr.msrb.gmra.mxu0 %vm557_vm0, %v2167_v43 }
  0xd4   : > { %1415 = vmatmul.msk.f32.vlgmr.msrb.gmra.mxu1 %vm557_vm0, %v2167_v43 }
  0xd5   : > { %1419 = vmatmul.msk.f32.vlgmr.msrb.gmra.mxu2 %vm557_vm0, %v2167_v43 }
  0xd6   : > { %1423 = vmatmul.msk.f32.vlgmr.msrb.gmra.mxu3 %vm557_vm0, %v2167_v43 }
  0xdb   : > { %1412 = vmatmul.msk.f32.gmra.mxu0 %vm557_vm0, %v534_v20 }
  0xdc   : > { %1416 = vmatmul.msk.f32.gmra.mxu1 %vm557_vm0, %v534_v20 }
  0xdd   : > { %1420 = vmatmul.msk.f32.gmra.mxu2 %vm557_vm0, %v534_v20 }
  0xde   : > { %1424 = vmatmul.msk.f32.gmra.mxu3 %vm557_vm0, %v534_v20 }
  0xe3   : > { %1413 = vmatmul.msk.f32.gmra.mxu0 %vm557_vm0, %v535_v15 }
  0xe4   : > { %1417 = vmatmul.msk.f32.gmra.mxu1 %vm557_vm0, %v535_v15 }
  0xe5   : > { %1421 = vmatmul.msk.f32.gmra.mxu2 %vm557_vm0, %v535_v15 }
  0xe6   : > { %1425 = vmatmul.msk.f32.gmra.mxu3 %vm557_vm0, %v535_v15 }
  0xeb   : > { %1414 = vmatmul.msk.f32.gmra.mxu0 %vm557_vm0, %v536_v30 }
  0xec   : > { %1418 = vmatmul.msk.f32.gmra.mxu1 %vm557_vm0, %v536_v30 }
  0xed   : > { %1422 = vmatmul.msk.f32.gmra.mxu2 %vm557_vm0, %v536_v30 }
  0xee   : > { %1426 = vmatmul.msk.f32.gmra.mxu3 %vm557_vm0, %v536_v30 }
 0x12f   : > { %v587_v44 = vpop.f32.mrf.mxu0 }
 0x130   : > { %v616_v16 = vpop.f32.mrf.mxu1  ;;  %v588_v12 = vadd.f32 %v587_v44, %v2241_v59 }
 0x131   : > { %v617_v13 = vadd.f32 %v616_v16, %v2241_v59 }
 0x132   : > { %1584 = vtanh.f32 %v588_v12 }
 0x133   : > { %1586 = vtanh.f32 %v617_v13 }
 0x137   : > { %v645_v36 = vpop.f32.mrf.mxu2  ;;  %v674_v52 = vpop.f32.mrf.mxu3 }
 0x138   : > { %v590_v53 = vpop.f32.mrf.mxu0  ;;  %v1585_v62 = vpop.eup %1584  ;;  %v646_v17 = vadd.f32 %v645_v36, %v2241_v59  ;;  %v675_v2 = vadd.f32 %v674_v52, %v2241_v59  ;;  %v1161_v36 = vadd.s32 24, %v2245_v50 }
 0x139   : > { %v619_v38 = vpop.f32.mrf.mxu1  ;;  %v591_v14 = vadd.f32 %v590_v53, %v2251_v27  ;;  %v1587_v0 = vpop.eup %1586 }
 0x13a   : > { %v620_v43 = vadd.f32 %v619_v38, %v2251_v27  ;;  %v2292_v38 = vld [vmem:[%s2519_s4 + $0x8] sm:$0xff]  ;;  %1516 = vset.pattern.permute.xlu1 %v1161_v36 }
 0x140   : > { %v648_v54 = vpop.f32.mrf.mxu2  ;;  %v593_v41 = vpop.f32.mrf.mxu0 }
 0x141   : > { %v677_v8 = vpop.f32.mrf.mxu3  ;;  %v622_v32 = vpop.f32.mrf.mxu1  ;;  %v594_v35 = vadd.f32 %v593_v41, %v2237_v18  ;;  %v649_v1 = vadd.f32 %v648_v54, %v2251_v27  ;;  %v1149_v54 = vadd.s32 8, %v2245_v50 }
 0x142   : > { %v623_v31 = vadd.f32 %v622_v32, %v2237_v18  ;;  %v678_v51 = vadd.f32 %v677_v8, %v2251_v27  ;;  %1163 = vperm.xlu1 %1516, %v2259_v45  }
 0x143   : > { %1514 = vset.pattern.permute.xlu2 %v1149_v54 }
 0x148   : > { %v651_v56 = vpop.f32.mrf.mxu2  ;;  %v596_v47 = vpop.f32.mrf.mxu0 }
 0x149   : > { %v680_v58 = vpop.f32.mrf.mxu3  ;;  %v597_v48 = vadd.f32 %v596_v47, %v2239_v19  ;;  %v625_v9 = vpop.f32.mrf.mxu1  ;;  %v652_v34 = vadd.f32 %v651_v56, %v2237_v18  ;;  %v2312_v47 = vld [vmem:[%s2519_s4 + $0x10] sm:$0xff] }
 0x14a   : > { %v626_v33 = vadd.f32 %v625_v9, %v2239_v19  ;;  %v681_v39 = vadd.f32 %v680_v58, %v2237_v18 }
 0x14b   : > { %1588 = vtanh.f32 %v597_v48  ;;  %1151 = vperm.xlu2 %1514, %v2259_v45  }
 0x14c   : > { %1590 = vtanh.f32 %v626_v33 }
 0x14d   : > { %1592 = vtanh.f32 %v594_v35 }
 0x14e   : > { %1594 = vtanh.f32 %v623_v31 }
 0x14f   : > { %1596 = vtanh.f32 %v591_v14 }
 0x150   : > { %v654_v61 = vpop.f32.mrf.mxu2  ;;  %v2261_v25 = vpop.f32.mrf.mxu0  ;;  %1598 = vtanh.f32 %v620_v43 }
 0x151   : > { %v655_v57 = vadd.f32 %v654_v61, %v2239_v19  ;;  %v683_v22 = vpop.f32.mrf.mxu3  ;;  %v2265_v63 = vpop.f32.mrf.mxu1  ;;  %v704_v41 = vadd.f32 %v2261_v25, %v2241_v59  ;;  %v2334_v61 = vld [vmem:[%s2519_s4 + $0x18] sm:$0xff] }
 0x152   : > { %v684_v49 = vadd.f32 %v683_v22, %v2239_v19  ;;  %v1589_v40 = vpop.eup %1588  ;;  %v733_v8 = vadd.f32 %v2265_v63, %v2241_v59 }
 0x153   : > { %1600 = vtanh.f32 %v655_v57  ;;  %v1591_v6 = vpop.eup %1590  ;;  %886 = vmatpush.msra.mxu0 %v1589_v40  ;;  %1517 = vset.pattern.permute.xlu2 %v1776_v3  ;;  %v1138_v3 = vld [vmem:[%s2516_s1 + $0x60] sm:$0x1] }
 0x154   : > { %1602 = vtanh.f32 %v684_v49  ;;  %v1593_v55 = vpop.eup %1592  ;;  %915 = vmatpush.msra.mxu1 %v1591_v6  ;;  %1271 = vperm.xlu2 %1517, %v1138_v3  }
 0x155   : > { %1604 = vtanh.f32 %v652_v34  ;;  %v1595_v60 = vpop.eup %1594  ;;  %887 = vmatpush.msra.mxu0 %v1593_v55 }
 0x156   : > { %1606 = vtanh.f32 %v681_v39  ;;  %v1597_v23 = vpop.eup %1596  ;;  %916 = vmatpush.msra.mxu1 %v1595_v60 }
 0x157   : > { %1608 = vtanh.f32 %v649_v1  ;;  %v1599_v42 = vpop.eup %1598  ;;  %888 = vmatpush.msra.mxu0 %v1597_v23 }
 0x158   : > { %1610 = vtanh.f32 %v678_v51  ;;  %v2275_v4 = vpop.f32.mrf.mxu2  ;;  %v706_v5 = vpop.f32.mrf.mxu0  ;;  %917 = vmatpush.msra.mxu1 %v1599_v42 }
 0x159   : > { %v1601_v20 = vpop.eup %1600  ;;  %1612 = vtanh.f32 %v646_v17  ;;  %v2277_v21 = vpop.f32.mrf.mxu3  ;;  %889 = vmatpush.msra.mxu0 %v1585_v62  ;;  %v707_v9 = vadd.f32 %v706_v5, %v2251_v27 }
 0x15a   : > { %v735_v24 = vpop.f32.mrf.mxu1  ;;  %v1603_v37 = vpop.eup %1602  ;;  %1614 = vtanh.f32 %v675_v2  ;;  %944 = vmatpush.msra.mxu2 %v1601_v20  ;;  %918 = vmatpush.msra.mxu1 %v1587_v0  ;;  %v791_v40 = vadd.f32 %v2277_v21, %v2241_v59 }
 0x15b   : > { %v1605_v11 = vpop.eup %1604  ;;  %973 = vmatpush.msra.mxu3 %v1603_v37  ;;  %1427 = vmatmul.msk.f32.vlgmr.msra.gmra.mxu0 %vm557_vm0, %v2282_v26  ;;  %1616 = vtanh.f32 %v704_v41  ;;  %v736_v33 = vadd.f32 %v735_v24, %v2251_v27  ;;  %v2402_v41 = vpop.permute.xlu2 %854 }
 0x15c   : > { %v1607_v7 = vpop.eup %1606  ;;  %1431 = vmatmul.msk.f32.vlgmr.msra.gmra.mxu1 %vm557_vm0, %v2282_v26  ;;  %945 = vmatpush.msra.mxu2 %v1605_v11  ;;  %1618 = vtanh.f32 %v733_v8 }
 0x15d   : > { %v1609_v28 = vpop.eup %1608  ;;  %974 = vmatpush.msra.mxu3 %v1607_v7 }
 0x15e   : > { %v1611_v29 = vpop.eup %1610  ;;  %946 = vmatpush.msra.mxu2 %v1609_v28 }
 0x15f   : > { %v1613_v15 = vpop.eup %1612  ;;  %975 = vmatpush.msra.mxu3 %v1611_v29 }
 0x160   : > { %v1615_v30 = vpop.eup %1614  ;;  %v764_v44 = vpop.f32.mrf.mxu2  ;;  %947 = vmatpush.msra.mxu2 %v1613_v15 }
 0x161   : > { %v709_v16 = vpop.f32.mrf.mxu0  ;;  %v793_v52 = vpop.f32.mrf.mxu3  ;;  %976 = vmatpush.msra.mxu3 %v1615_v30  ;;  %1435 = vmatmul.msk.f32.vlgmr.msra.gmra.mxu2 %vm557_vm0, %v2282_v26  ;;  %v765_v63 = vadd.f32 %v764_v44, %v2251_v27 }
 0x162   : > { %v738_v53 = vpop.f32.mrf.mxu1  ;;  %1439 = vmatmul.msk.f32.vlgmr.msra.gmra.mxu3 %vm557_vm0, %v2282_v26  ;;  %v710_v58 = vadd.f32 %v709_v16, %v2237_v18  ;;  %v1617_v31 = vpop.eup %1616  ;;  %v794_v0 = vadd.f32 %v793_v52, %v2251_v27 }
 0x163   : > { %1428 = vmatmul.msk.f32.gmra.mxu0 %vm557_vm0, %v2292_v38  ;;  %v739_v48 = vadd.f32 %v738_v53, %v2237_v18  ;;  %v1619_v25 = vpop.eup %1618  ;;  %v2393_v15 = vpop.permute.xlu0 %844 }
 0x164   : > { %1432 = vmatmul.msk.f32.gmra.mxu1 %vm557_vm0, %v2292_v38  ;;  %v2396_v44 = vpop.permute.xlu1 %849 }
 0x168   : > { %v767_v32 = vpop.f32.mrf.mxu2 }
 0x169   : > { %v712_v46 = vpop.f32.mrf.mxu0  ;;  %v796_v12 = vpop.f32.mrf.mxu3  ;;  %1436 = vmatmul.msk.f32.gmra.mxu2 %vm557_vm0, %v2292_v38  ;;  %v768_v62 = vadd.f32 %v767_v32, %v2237_v18 }
 0x16a   : > { %v713_v13 = vadd.f32 %v712_v46, %v2239_v19  ;;  %v741_v56 = vpop.f32.mrf.mxu1  ;;  %1440 = vmatmul.msk.f32.gmra.mxu3 %vm557_vm0, %v2292_v38  ;;  %v797_v57 = vadd.f32 %v796_v12, %v2237_v18  ;;  %v762_v18 = vadd.f32 %v2275_v4, %v2241_v59 }
 0x16b   : > { %v742_v50 = vadd.f32 %v741_v56, %v2239_v19  ;;  %1429 = vmatmul.msk.f32.gmra.mxu0 %vm557_vm0, %v2312_v47 }
 0x16c   : > { %1433 = vmatmul.msk.f32.gmra.mxu1 %vm557_vm0, %v2312_v47  ;;  %1620 = vtanh.f32 %v713_v13 }
 0x16d   : > { %1622 = vtanh.f32 %v742_v50 }
 0x16e   : > { %1624 = vtanh.f32 %v710_v58 }
 0x16f   : > { %1626 = vtanh.f32 %v739_v48 }
 0x170   : > { %v770_v35 = vpop.f32.mrf.mxu2  ;;  %1628 = vtanh.f32 %v707_v9 }
 0x171   : > { %v771_v14 = vadd.f32 %v770_v35, %v2239_v19  ;;  %v799_v43 = vpop.f32.mrf.mxu3  ;;  %1630 = vtanh.f32 %v736_v33  ;;  %1437 = vmatmul.msk.f32.gmra.mxu2 %vm557_vm0, %v2312_v47 }
 0x172   : > { %v800_v34 = vadd.f32 %v799_v43, %v2239_v19  ;;  %1441 = vmatmul.msk.f32.gmra.mxu3 %vm557_vm0, %v2312_v47  ;;  %v1621_v45 = vpop.eup %1620 }
 0x173   : > { %1632 = vtanh.f32 %v771_v14  ;;  %v1623_v22 = vpop.eup %1622  ;;  %1430 = vmatmul.msk.f32.gmra.mxu0 %vm557_vm0, %v2334_v61 }
 0x174   : > { %1634 = vtanh.f32 %v800_v34  ;;  %1434 = vmatmul.msk.f32.gmra.mxu1 %vm557_vm0, %v2334_v61  ;;  %v1625_v19 = vpop.eup %1624  ;;  %1002 = vmatpush.msrb.mxu0 %v1621_v45  ;;  %v2415_v34 = vpop.permute.xlu1 %1145 }
 0x175   : > { %1031 = vmatpush.msrb.mxu1 %v1623_v22  ;;  %v1627_v39 = vpop.eup %1626  ;;  %1636 = vtanh.f32 %v768_v62 }
 0x176   : > { %v1629_v49 = vpop.eup %1628  ;;  %1638 = vtanh.f32 %v797_v57  ;;  %1003 = vmatpush.msrb.mxu0 %v1625_v19 }
 0x177   : > { %1032 = vmatpush.msrb.mxu1 %v1627_v39  ;;  %v1631_v1 = vpop.eup %1630  ;;  %1640 = vtanh.f32 %v765_v63 }
 0x178   : > { %1642 = vtanh.f32 %v794_v0  ;;  %1004 = vmatpush.msrb.mxu0 %v1629_v49 }
 0x179   : > { %v1633_v6 = vpop.eup %1632  ;;  %1033 = vmatpush.msrb.mxu1 %v1631_v1  ;;  %1644 = vtanh.f32 %v762_v18  ;;  %1438 = vmatmul.msk.f32.gmra.mxu2 %vm557_vm0, %v2334_v61 }
 0x17a   : > { %v1635_v27 = vpop.eup %1634  ;;  %1442 = vmatmul.msk.f32.gmra.mxu3 %vm557_vm0, %v2334_v61  ;;  %1646 = vtanh.f32 %v791_v40  ;;  %1005 = vmatpush.msrb.mxu0 %v1617_v31 }
 0x17b   : > { %1034 = vmatpush.msrb.mxu1 %v1619_v25  ;;  %v1637_v59 = vpop.eup %1636  ;;  %1060 = vmatpush.msrb.mxu2 %v1633_v6 }
 0x17c   : > { %1089 = vmatpush.msrb.mxu3 %v1635_v27  ;;  %v1639_v51 = vpop.eup %1638  ;;  %1443 = vmatmul.msk.f32.vlgmr.msrb.gmra.mxu0 %vm557_vm0, %v2282_v26 }
 0x17d   : > { %1447 = vmatmul.msk.f32.vlgmr.msrb.gmra.mxu1 %vm557_vm0, %v2282_v26  ;;  %v1641_v55 = vpop.eup %1640  ;;  %1061 = vmatpush.msrb.mxu2 %v1637_v59 }
 0x17e   : > { %1090 = vmatpush.msrb.mxu3 %v1639_v51  ;;  %v1643_v17 = vpop.eup %1642 }
 0x17f   : > { %v1645_v60 = vpop.eup %1644  ;;  %1062 = vmatpush.msrb.mxu2 %v1641_v55 }
 0x180   : > { %1091 = vmatpush.msrb.mxu3 %v1643_v17  ;;  %v1647_v2 = vpop.eup %1646 }
 0x181   : > { %1063 = vmatpush.msrb.mxu2 %v1645_v60 }
 0x182   : > { %1092 = vmatpush.msrb.mxu3 %v1647_v2  ;;  %1451 = vmatmul.msk.f32.vlgmr.msrb.gmra.mxu2 %vm557_vm0, %v2282_v26 }
 0x183   : > { %1455 = vmatmul.msk.f32.vlgmr.msrb.gmra.mxu3 %vm557_vm0, %v2282_v26 }
 0x184   : > { %1444 = vmatmul.msk.f32.gmra.mxu0 %vm557_vm0, %v2292_v38 }
 0x185   : > { %1448 = vmatmul.msk.f32.gmra.mxu1 %vm557_vm0, %v2292_v38 }
 0x18a   : > { %1452 = vmatmul.msk.f32.gmra.mxu2 %vm557_vm0, %v2292_v38 }
 0x18b   : > { %1456 = vmatmul.msk.f32.gmra.mxu3 %vm557_vm0, %v2292_v38 }
 0x18c   : > { %1445 = vmatmul.msk.f32.gmra.mxu0 %vm557_vm0, %v2312_v47 }
 0x18d   : > { %1449 = vmatmul.msk.f32.gmra.mxu1 %vm557_vm0, %v2312_v47 }
 0x192   : > { %1453 = vmatmul.msk.f32.gmra.mxu2 %vm557_vm0, %v2312_v47 }
 0x193   : > { %1457 = vmatmul.msk.f32.gmra.mxu3 %vm557_vm0, %v2312_v47  ;;  %v2408_v47 = vpop.permute.xlu0 %859 }
 0x194   : > { %1446 = vmatmul.msk.f32.gmra.mxu0 %vm557_vm0, %v2334_v61 }
 0x195   : > { %1450 = vmatmul.msk.f32.gmra.mxu1 %vm557_vm0, %v2334_v61 }
 0x19a   : > { %1454 = vmatmul.msk.f32.gmra.mxu2 %vm557_vm0, %v2334_v61 }
 0x19b   : > { %1458 = vmatmul.msk.f32.gmra.mxu3 %vm557_vm0, %v2334_v61  ;;  %v2428_v60 = vpop.permute.xlu0 %1157 }
 0x1a5   : > { %v2422_v49 = vpop.permute.xlu2 %1151 }
 0x1d8   : > { %v891_v23 = vpop.f32.mrf.mxu0 }
 0x1d9   : > { %v920_v10 = vpop.f32.mrf.mxu1  ;;  %v892_v30 = vadd.f32 %v891_v23, %v2393_v15 }
 0x1da   : > { %v921_v16 = vadd.f32 %v920_v10, %v2393_v15 }
 0x1db   : > { %1648 = vtanh.f32 %v892_v30 }
 0x1dc   : > { %1650 = vtanh.f32 %v921_v16 }
 0x1e0   : > { %v894_v42 = vpop.f32.mrf.mxu0 }
 0x1e1   : > { %v923_v4 = vpop.f32.mrf.mxu1  ;;  %v895_v36 = vadd.f32 %v894_v42, %v2396_v44  ;;  %v1649_v58 = vpop.eup %1648 }
 0x1e2   : > { %v924_v52 = vadd.f32 %v923_v4, %v2396_v44  ;;  %v1651_v9 = vpop.eup %1650 }
 0x1e3   : > { %1652 = vtanh.f32 %v895_v36  ;;  %v1166_v4 = vmul.f32 %v1651_v9, %v2415_v34 }
 0x1e4   : > { %v949_v5 = vpop.f32.mrf.mxu2  ;;  %1654 = vtanh.f32 %v924_v52 }
 0x1e5   : > { %v978_v20 = vpop.f32.mrf.mxu3  ;;  %v950_v54 = vadd.f32 %v949_v5, %v2393_v15 }
 0x1e6   : > { %v979_v8 = vadd.f32 %v978_v20, %v2393_v15  ;;  %v2434_v20 = vpop.permute.xlu1 %1163 }
 0x1e7   : > { %1656 = vtanh.f32 %v950_v54 }
 0x1e8   : > { %v897_v21 = vpop.f32.mrf.mxu0  ;;  %1658 = vtanh.f32 %v979_v8 }
 0x1e9   : > { %v926_v24 = vpop.f32.mrf.mxu1  ;;  %v898_v32 = vadd.f32 %v897_v21, %v2402_v41  ;;  %v1653_v14 = vpop.eup %1652 }
 0x1ea   : > { %v927_v13 = vadd.f32 %v926_v24, %v2402_v41  ;;  %v1655_v61 = vpop.eup %1654  ;;  %v1173_v5 = vmul.f32 %v1653_v14, %v2422_v49 }
 0x1eb   : > { %1660 = vtanh.f32 %v898_v32  ;;  %v1174_v17 = vmul.f32 %v1655_v61, %v2422_v49 }
 0x1ec   : > { %v952_v26 = vpop.f32.mrf.mxu2  ;;  %1662 = vtanh.f32 %v927_v13 }
 0x1ed   : > { %v981_v37 = vpop.f32.mrf.mxu3  ;;  %v953_v56 = vadd.f32 %v952_v26, %v2396_v44  ;;  %v1657_v62 = vpop.eup %1656  ;;  %v1206_v30 = vadd.f32 %v1174_v17, %v1166_v4 }
 0x1ee   : > { %v982_v50 = vadd.f32 %v981_v37, %v2396_v44  ;;  %v1659_v57 = vpop.eup %1658  ;;  %v1167_v36 = vmul.f32 %v1657_v62, %v2415_v34 }
 0x1ef   : > { %1664 = vtanh.f32 %v953_v56  ;;  %v1168_v52 = vmul.f32 %v1659_v57, %v2415_v34 }
 0x1f0   : > { %v900_v11 = vpop.f32.mrf.mxu0  ;;  %1666 = vtanh.f32 %v982_v50 }
 0x1f1   : > { %v929_v7 = vpop.f32.mrf.mxu1  ;;  %v901_v48 = vadd.f32 %v900_v11, %v2408_v47  ;;  %v1661_v0 = vpop.eup %1660 }
 0x1f2   : > { %v930_v33 = vadd.f32 %v929_v7, %v2408_v47  ;;  %v1663_v18 = vpop.eup %1662  ;;  %v1181_v61 = vmul.f32 %v1661_v0, %v2428_v60 }
 0x1f3   : > { %1668 = vtanh.f32 %v901_v48  ;;  %v1182_v37 = vmul.f32 %v1663_v18, %v2428_v60 }
 0x1f4   : > { %v955_v28 = vpop.f32.mrf.mxu2  ;;  %1670 = vtanh.f32 %v930_v33 }
 0x1f5   : > { %v984_v29 = vpop.f32.mrf.mxu3  ;;  %v956_v43 = vadd.f32 %v955_v28, %v2402_v41  ;;  %v1665_v1 = vpop.eup %1664  ;;  %v1207_v56 = vadd.f32 %v1206_v30, %v1182_v37 }
 0x1f6   : > { %v985_v25 = vadd.f32 %v984_v29, %v2402_v41  ;;  %v1667_v27 = vpop.eup %1666  ;;  %v1175_v24 = vmul.f32 %v1665_v1, %v2422_v49  ;;  %v1165_v29 = vmul.f32 %v1649_v58, %v2415_v34 }
 0x1f7   : > { %1672 = vtanh.f32 %v956_v43  ;;  %v1176_v26 = vmul.f32 %v1667_v27, %v2422_v49 }
 0x1f8   : > { %1674 = vtanh.f32 %v985_v25  ;;  %v1197_v54 = vadd.f32 %v1173_v5, %v1165_v29 }
 0x1f9   : > { %v1007_v53 = vpop.f32.mrf.mxu0  ;;  %v1669_v55 = vpop.eup %1668  ;;  %v1224_v13 = vadd.f32 %v1176_v26, %v1168_v52 }
 0x1fa   : > { %v1036_v38 = vpop.f32.mrf.mxu1  ;;  %v1008_v39 = vadd.f32 %v1007_v53, %v2393_v15  ;;  %v1671_v23 = vpop.eup %1670  ;;  %v1189_v62 = vmul.f32 %v1669_v55, %v2434_v20  ;;  %v1198_v17 = vadd.f32 %v1197_v54, %v1181_v61 }
 0x1fb   : > { %v1037_v40 = vadd.f32 %v1036_v38, %v2393_v15  ;;  %v1190_v32 = vmul.f32 %v1671_v23, %v2434_v20 }
 0x1fc   : > { %v958_v46 = vpop.f32.mrf.mxu2  ;;  %v1199_v4 = vadd.f32 %v1198_v17, %v1189_v62 }
 0x1fd   : > { %v987_v12 = vpop.f32.mrf.mxu3  ;;  %v959_v45 = vadd.f32 %v958_v46, %v2408_v47  ;;  %v1673_v42 = vpop.eup %1672 }
 0x1fe   : > { %v988_v22 = vadd.f32 %v987_v12, %v2408_v47  ;;  %v1675_v21 = vpop.eup %1674  ;;  %v1183_v53 = vmul.f32 %v1673_v42, %v2428_v60  ;;  %v1215_v12 = vadd.f32 %v1175_v24, %v1167_v36 }
 0x1ff   : > { %1676 = vtanh.f32 %v959_v45  ;;  %v1184_v8 = vmul.f32 %v1675_v21, %v2428_v60 }
 0x200   : > { %1678 = vtanh.f32 %v988_v22  ;;  %v1216_v25 = vadd.f32 %v1215_v12, %v1183_v53  ;;  %v1200_v12 = vrot.slane %v1199_v4, 4 }
 0x201   : > { %v1010_v35 = vpop.f32.mrf.mxu0  ;;  %1680 = vtanh.f32 %v1008_v39  ;;  %v1225_v22 = vadd.f32 %v1224_v13, %v1184_v8  ;;  %v1208_v39 = vadd.f32 %v1207_v56, %v1190_v32 }
 0x202   : > { %v1039_v31 = vpop.f32.mrf.mxu1  ;;  %v1011_v6 = vadd.f32 %v1010_v35, %v2396_v44  ;;  %1682 = vtanh.f32 %v1037_v40 }
 0x203   : > { %v1040_v59 = vadd.f32 %v1039_v31, %v2396_v44  ;;  %v1209_v26 = vrot.slane %v1208_v39, 4 }
 0x204   : > { %1684 = vtanh.f32 %v1011_v6 }
 0x205   : > { %v1065_v63 = vpop.f32.mrf.mxu2  ;;  %1686 = vtanh.f32 %v1040_v59  ;;  %v1677_v28 = vpop.eup %1676  ;;  %v1210_v13 = vadd.f32 %v1209_v26, %v1208_v39 }
 0x206   : > { %v2419_v19 = vpop.f32.mrf.mxu3  ;;  %v1679_v16 = vpop.eup %1678  ;;  %v1191_v50 = vmul.f32 %v1677_v28, %v2434_v20  ;;  %v1066_v35 = vadd.f32 %v1065_v63, %v2393_v15 }
 0x207   : > { %v1681_v38 = vpop.eup %1680  ;;  %v1192_v33 = vmul.f32 %v1679_v16, %v2434_v20  ;;  %v1095_v45 = vadd.f32 %v2419_v19, %v2393_v15  ;;  %v1211_v62 = vrot.slane %v1210_v13, 2 }
 0x208   : > { %v1683_v46 = vpop.eup %1682  ;;  %v1217_v40 = vadd.f32 %v1216_v25, %v1191_v50  ;;  %v1169_v19 = vmul.f32 %v1681_v38, %v2415_v34  ;;  %v1201_v25 = vadd.f32 %v1200_v12, %v1199_v4 }
 0x209   : > { %v1013_v3 = vpop.f32.mrf.mxu0  ;;  %v1226_v59 = vadd.f32 %v1225_v22, %v1192_v33 }
 0x20a   : > { %v1042_v51 = vpop.f32.mrf.mxu1  ;;  %v1014_v2 = vadd.f32 %v1013_v3, %v2402_v41  ;;  %v1685_v9 = vpop.eup %1684  ;;  %v1218_v23 = vrot.slane %v1217_v40, 4 }
 0x20b   : > { %v1043_v10 = vadd.f32 %v1042_v51, %v2402_v41  ;;  %v1687_v43 = vpop.eup %1686  ;;  %v1177_v1 = vmul.f32 %v1685_v9, %v2422_v49  ;;  %v1227_v5 = vrot.slane %v1226_v59, 4 }
 0x20c   : > { %1688 = vtanh.f32 %v1014_v2  ;;  %v1178_v3 = vmul.f32 %v1687_v43, %v2422_v49  ;;  %v1170_v2 = vmul.f32 %v1683_v46, %v2415_v34  ;;  %v1219_v30 = vadd.f32 %v1218_v23, %v1217_v40 }
 0x20d   : > { %v1068_v11 = vpop.f32.mrf.mxu2  ;;  %1690 = vtanh.f32 %v1043_v10  ;;  %v1233_v10 = vadd.f32 %v1177_v1, %v1169_v19  ;;  %v1228_v38 = vadd.f32 %v1227_v5, %v1226_v59  ;;  %v1202_v59 = vrot.slane %v1201_v25, 2 }
 0x20e   : > { %v1097_v7 = vpop.f32.mrf.mxu3  ;;  %v1069_v18 = vadd.f32 %v1068_v11, %v2396_v44  ;;  %v1242_v21 = vadd.f32 %v1178_v3, %v1170_v2  ;;  %v1212_v3 = vadd.f32 %v1211_v62, %v1210_v13 }
 0x20f   : > { %v1098_v6 = vadd.f32 %v1097_v7, %v2396_v44  ;;  %v1203_v23 = vadd.f32 %v1202_v59, %v1201_v25 }
 0x210   : > { %v1213_v5 = vrot.slane %v1212_v3, 1 }
 0x211   : > { %v1016_v58 = vpop.f32.mrf.mxu0 }
 0x212   : > { %v1045_v48 = vpop.f32.mrf.mxu1  ;;  %v1017_v31 = vadd.f32 %v1016_v58, %v2408_v47  ;;  %v1689_v57 = vpop.eup %1688 }
 0x213   : > { %v1046_v14 = vadd.f32 %v1045_v48, %v2408_v47  ;;  %v1691_v63 = vpop.eup %1690  ;;  %v1185_v51 = vmul.f32 %v1689_v57, %v2428_v60 }
 0x214   : > { %1692 = vtanh.f32 %v1017_v31  ;;  %v1186_v44 = vmul.f32 %v1691_v63, %v2428_v60  ;;  %v1229_v31 = vrot.slane %v1228_v38, 2 }
 0x215   : > { %1694 = vtanh.f32 %v1046_v14  ;;  %v1071_v0 = vpop.f32.mrf.mxu2  ;;  %v1234_v37 = vadd.f32 %v1233_v10, %v1185_v51 }
 0x216   : > { %v1100_v27 = vpop.f32.mrf.mxu3  ;;  %1696 = vtanh.f32 %v1066_v35  ;;  %v1072_v15 = vadd.f32 %v1071_v0, %v2402_v41  ;;  %v1243_v7 = vadd.f32 %v1242_v21, %v1186_v44  ;;  %v1220_v35 = vrot.slane %v1219_v30, 2 }
 0x217   : > { %1698 = vtanh.f32 %v1095_v45  ;;  %v1101_v55 = vadd.f32 %v1100_v27, %v2402_v41  ;;  %v1230_v1 = vadd.f32 %v1229_v31, %v1228_v38 }
 0x218   : > { %1700 = vtanh.f32 %v1069_v18  ;;  %v1221_v40 = vadd.f32 %v1220_v35, %v1219_v30  ;;  %v1272_v30 = vpop.permute.xlu2 %1271 }
 0x219   : > { %1702 = vtanh.f32 %v1098_v6  ;;  %v1231_v2 = vrot.slane %v1230_v1, 1 }
 0x21a   : > { %v1693_v42 = vpop.eup %1692  ;;  %1704 = vtanh.f32 %v1072_v15  ;;  %v1222_v17 = vrot.slane %v1221_v40, 1 }
 0x21b   : > { %v1695_v24 = vpop.eup %1694  ;;  %v1193_v11 = vmul.f32 %v1693_v42, %v2434_v20  ;;  %1706 = vtanh.f32 %v1101_v55 }
 0x21c   : > { %v1697_v41 = vpop.eup %1696  ;;  %v1194_v28 = vmul.f32 %v1695_v24, %v2434_v20  ;;  %v1223_v26 = vadd.f32 %v1222_v17, %v1221_v40 }
 0x21d   : > { %v1699_v29 = vpop.eup %1698  ;;  %v1235_v16 = vadd.f32 %v1234_v37, %v1193_v11  ;;  %v1074_v36 = vpop.f32.mrf.mxu2  ;;  %v1171_v61 = vmul.f32 %v1697_v41, %v2415_v34  ;;  %v1232_v37 = vadd.f32 %v1231_v2, %v1230_v1  ;;  %v1204_v41 = vrot.slane %v1203_v23, 1 }
 0x21e   : > { %v1103_v52 = vpop.f32.mrf.mxu3  ;;  %v1701_v53 = vpop.eup %1700  ;;  %v1244_v54 = vadd.f32 %v1243_v7, %v1194_v28  ;;  %v1075_v8 = vadd.f32 %v1074_v36, %v2408_v47  ;;  %v1172_v45 = vmul.f32 %v1699_v29, %v2415_v34 }
 0x21f   : > { %v1104_v32 = vadd.f32 %v1103_v52, %v2408_v47  ;;  %v1703_v46 = vpop.eup %1702  ;;  %v1236_v56 = vrot.slane %v1235_v16, 4  ;;  %v1179_v9 = vmul.f32 %v1701_v53, %v2422_v49  ;;  %v1276_v52 = vadd.f32 %v1272_v30, %v1223_v26 }
 0x220   : > { %v1705_v50 = vpop.eup %1704  ;;  %v1245_v58 = vrot.slane %v1244_v54, 4  ;;  %1708 = vtanh.f32 %v1075_v8  ;;  %v1180_v14 = vmul.f32 %v1703_v46, %v2422_v49  ;;  %v1277_v53 = vadd.f32 %v1272_v30, %v1232_v37 }
 0x221   : > { %v1707_v48 = vpop.eup %1706  ;;  %v1237_v33 = vadd.f32 %v1236_v56, %v1235_v16  ;;  %1710 = vtanh.f32 %v1104_v32  ;;  %v1187_v47 = vmul.f32 %v1705_v50, %v2428_v60  ;;  %v1251_v18 = vadd.f32 %v1179_v9, %v1171_v61 }
 0x222   : > { %v1246_v43 = vadd.f32 %v1245_v58, %v1244_v54  ;;  %v1188_v39 = vmul.f32 %v1707_v48, %v2428_v60  ;;  %v1260_v6 = vadd.f32 %v1180_v14, %v1172_v45  ;;  %v1205_v54 = vadd.f32 %v1204_v41, %v1203_v23 }
 0x223   : > { %v1238_v57 = vrot.slane %v1237_v33, 2  ;;  %v1252_v49 = vadd.f32 %v1251_v18, %v1187_v47  ;;  %v1291_v50 = vrot.slane %v1276_v52, 6  ;;  %v1292_v58 = vrot.slane %v1277_v53, 5 }
 0x224   : > { %v1247_v22 = vrot.slane %v1246_v43, 2  ;;  %v1261_v51 = vadd.f32 %v1260_v6, %v1188_v39  ;;  %v1274_v48 = vadd.f32 %v1272_v30, %v1205_v54 }
 0x225   : > { %v1239_v15 = vadd.f32 %v1238_v57, %v1237_v33  ;;  %v1300_v47 = vsel %vm1299_vm1, %v1291_v50, %v1292_v58 }
 0x226   : > { %v1709_v63 = vpop.eup %1708  ;;  %v1248_v19 = vadd.f32 %v1247_v22, %v1246_v43 }
 0x227   : > { %v1711_v0 = vpop.eup %1710  ;;  %v1195_v27 = vmul.f32 %v1709_v63, %v2434_v20  ;;  %v1240_v10 = vrot.slane %v1239_v15, 1 }
 0x228   : > { %v1196_v34 = vmul.f32 %v1711_v0, %v2434_v20  ;;  %v1249_v42 = vrot.slane %v1248_v19, 1  ;;  %v1214_v20 = vadd.f32 %v1213_v5, %v1212_v3 }
 0x229   : > { %v1253_v55 = vadd.f32 %v1252_v49, %v1195_v27  ;;  %v1241_v28 = vadd.f32 %v1240_v10, %v1239_v15 }
 0x22a   : > { %v1262_v60 = vadd.f32 %v1261_v51, %v1196_v34  ;;  %v1250_v29 = vadd.f32 %v1249_v42, %v1248_v19  ;;  %v1275_v32 = vadd.f32 %v1272_v30, %v1214_v20 }
 0x22b   : > { %v1254_v44 = vrot.slane %v1253_v55, 4  ;;  %v1278_v46 = vadd.f32 %v1272_v30, %v1241_v28 }
 0x22c   : > { %v1263_v4 = vrot.slane %v1262_v60, 4  ;;  %v1279_v12 = vadd.f32 %v1272_v30, %v1250_v29  ;;  %v1290_v35 = vrot.slane %v1275_v32, 7 }
 0x22d   : > { %v1255_v21 = vadd.f32 %v1254_v44, %v1253_v55  ;;  %v1293_v31 = vrot.slane %v1278_v46, 4 }
 0x22e   : > { %v1264_v24 = vadd.f32 %v1263_v4, %v1262_v60  ;;  %v1294_v14 = vrot.slane %v1279_v12, 3  ;;  %v1298_v25 = vsel %vm1297_vm2, %v1274_v48, %v1290_v35 }
 0x22f   : > { %v1256_v11 = vrot.slane %v1255_v21, 2  ;;  %v1302_v57 = vsel %vm1301_vm5, %v1298_v25, %v1300_v47 }
 0x230   : > { %v1265_v7 = vrot.slane %v1264_v24, 2  ;;  %v1304_v62 = vsel %vm1303_vm3, %v1293_v31, %v1294_v14 }
 0x231   : > { %v1257_v16 = vadd.f32 %v1256_v11, %v1255_v21 }
 0x232   : > { %v1266_v36 = vadd.f32 %v1265_v7, %v1264_v24 }
 0x233   : > { %v1258_v38 = vrot.slane %v1257_v16, 1 }
 0x234   : > { %v1267_v8 = vrot.slane %v1266_v36, 1 }
 0x235   : > { %v1259_v13 = vadd.f32 %v1258_v38, %v1257_v16 }
 0x236   : > { %v1268_v56 = vadd.f32 %v1267_v8, %v1266_v36 }
 0x237   : > { %v1280_v9 = vadd.f32 %v1272_v30, %v1259_v13 }
 0x238   : > { %v1281_v33 = vadd.f32 %v1272_v30, %v1268_v56 }
 0x239   : > { %v1295_v43 = vrot.slane %v1280_v9, 2 }
 0x23a   : > { %v1296_v61 = vrot.slane %v1281_v33, 1 }
 0x23c   : > { %v1306_v45 = vsel %vm1305_vm4, %v1295_v43, %v1296_v61 }
 0x23d   : > { %v1308_v22 = vsel %vm1307_vm6, %v1304_v62, %v1306_v45 }
 0x23e   : > { %v1310_v39 = vsel %vm1309_vm7, %v1302_v57, %v1308_v22 }
 0x23f   : > { %1312 = vst [vmem:[%s245_s12] sm:$0xff] %v1310_v39 }
 0x240   : > { %1739 = shalt.err (!%p1736_p3)
}
 0x241   : > { %1463 = dma.vmem_to_hbm [thread:$0]  (%p1850_p5), %s1327_s13, 128, %s1329_s14, %s1314_s11  }
 0x242 PF: > { %p1469_p4 = scmp.ge.s32.totalorder %s1774_s24, 2  ;;  %s1340_s26 = sand.u32 1, %s1762_s21  }
 0x243   : > { %s1341_s28 = scalar_lea.sflag [#allocation3], %s1340_s26 }
 0x244   : > { %p1466_p7 = pnand %p1469_p4, %p1854_p6 }
 0x246   : > { %p1467_p8 = pneg %p1466_p7 }
 0x248   : > { %1757 = dma.done.wait (%p1467_p8), %s1341_s28, 128  }
 0x249   : > { %1759 = vsyncadd (%p1467_p8), %s1341_s28, 4294967168  ;;  %p16_p9 = scmp.ge.s32.totalorder %s1836_s27, 4   ;;  %s2524_s21 = smov %s1766_s22 }
 0x24a   : > { %s2525_s22 = smov %s1770_s23  ;;  %s2526_s23 = smov %s1848_s30 }
 0x24b   : > { %s2527_s24 = smov %s1836_s27  ;;  %18 = sbr.rel (!%p16_p9) target bundleno = 3 (0x3), region = 79 }
 0x250   :  { %1347 = vsyncpa [#allocation3], 1 }
 0x251   :  { %1349 = vsyncpa [#allocation3 + $0x1], 1 }

</bundles_post_ra>
